<compile_context>
chip_gen: v7x
topology: tpu7x:2x2x1
jax: 0.10.0
libtpu: 0.0.40
codegen_flags: <defaults>
</compile_context>

<pallas_src>
import jax
import jax.numpy as jnp
from jax.experimental import pallas as pl
from jax.experimental.pallas import tpu as pltpu

D_MODEL = 32
NUM_HEADS = 4
D_HEAD = D_MODEL // NUM_HEADS
STAGE = 2            # 'else' branch of the reference module (no window shift)
LN_EPS = 1e-5


def _attn_layer_kernel(xq_ref, xkv_ref, pbias_ref,
                       wqkv_ref, wo_ref, bqkv_ref, rowp_ref,
                       out_ref, attn_ref):
    B, N, C = xq_ref.shape
    M = xkv_ref.shape[1]
    H, c = NUM_HEADS, D_HEAD
    bf16 = jnp.bfloat16
    f32 = jnp.float32

    xq = xq_ref[...]                                   # (B, N, C) — residual
    xq2 = xq.reshape(B * N, C)
    xkv2 = xkv_ref[...].reshape(B * M, C)

    rowp = rowp_ref[...]                               # (3, C): bo, gamma, beta
    bo = rowp[0:1]
    gamma = rowp[1:2]
    beta = rowp[2:3]

    # ---- fused Q|K|V projection: one bf16 MXU matmul, f32 accumulation ----
    # Weights are pre-transposed to (C, 3C) and the 1/sqrt(d_head) scale is
    # folded into the Wq / bq columns (and into pbias) by the wrapper.
    x_all = jnp.concatenate([xq2, xkv2], axis=0)       # (B*N + B*M, C)
    qkv = jnp.dot(x_all.astype(bf16), wqkv_ref[...],
                  preferred_element_type=f32) + bqkv_ref[...]   # (rows, 3C)

    q2 = qkv[:B * N, 0 * C:1 * C].reshape(B, N, C)     # q*scale
    k2 = qkv[B * N:, 1 * C:2 * C].reshape(B, M, C)
    v2 = qkv[B * N:, 2 * C:3 * C].reshape(B, M, C)

    # ---- head-batched attention: heads moved to the leading batch dim -----
    q_hb = jnp.concatenate([q2[:, :, h * c:(h + 1) * c] for h in range(H)],
                           axis=0)                     # (H*B, N, c)
    k_hb = jnp.concatenate([k2[:, :, h * c:(h + 1) * c] for h in range(H)],
                           axis=0)                     # (H*B, M, c)
    v_hb = jnp.concatenate([v2[:, :, h * c:(h + 1) * c] for h in range(H)],
                           axis=0)                     # (H*B, M, c)

    pbias = pbias_ref[...]                             # (N, M), per-head identical

    s = jnp.einsum('bnc,bmc->bnm', q_hb.astype(bf16), k_hb.astype(bf16),
                   preferred_element_type=f32) + pbias            # (H*B, N, M)
    # numerically-stable softmax over keys (single batched softmax)
    s = s - jnp.max(s, axis=-1, keepdims=True)
    e = jnp.exp(s)
    a = e * pl.reciprocal(jnp.sum(e, axis=-1, keepdims=True), approx=True)

    attn_ref[...] = a                                  # single store, (H*B, N, M)

    hid = jnp.einsum('bnm,bmc->bnc', a.astype(bf16), v_hb.astype(bf16),
                     preferred_element_type=f32)       # (H*B, N, c)
    # 'b h n c -> b n (h c)'
    hidden = jnp.concatenate([hid[h * B:(h + 1) * B] for h in range(H)],
                             axis=-1).reshape(B * N, C)

    # ---- output linear + dropout(None)=identity + residual + LayerNorm ----
    y = jnp.dot(hidden.astype(bf16), wo_ref[...], preferred_element_type=f32) + bo
    z = y + xq2
    mu = jnp.mean(z, axis=-1, keepdims=True)
    var = jnp.mean((z - mu) ** 2, axis=-1, keepdims=True)
    z_hat = (z - mu) * jax.lax.rsqrt(var + LN_EPS)
    out_ref[...] = (z_hat * gamma + beta).reshape(B, N, C)


def pack_params(params):
    """One-time parameter packing (hoisted out of the call path)."""
    C = D_MODEL
    scale = 1.0 / (D_HEAD ** 0.5)
    f32, bf16 = jnp.float32, jnp.bfloat16
    wqkv = jnp.concatenate([params["wq"].T * scale,      # scale folded into Wq
                            params["wk"].T,
                            params["wv"].T], axis=1)      # (C, 3C), x @ W layout
    bqkv = jnp.concatenate([params["bq"] * scale,
                            params["bk"],
                            params["bv"]]).reshape(1, 3 * C)
    rowp = jnp.stack([params["bo"], params["gamma"], params["beta"]], axis=0)  # (3, C)
    return {
        "wqkv": wqkv.astype(bf16),
        "wo": params["wo"].T.astype(bf16),
        "bqkv": bqkv.astype(f32),
        "rowp": rowp.astype(f32),
        "wp_s": (params["wp"] * scale).astype(f32),       # (1, 3), scale folded
        "bp_s": (params["bp"] * scale).astype(f32),       # (1,)
    }


@jax.jit
def swift_rpe_attention_layer(input_states, memory_states, position_states, packed):
    """Pallas forward. Returns (output_states (B,N,C), attention_scores (B,H,N,M))."""
    B, N, C = input_states.shape
    M = memory_states.shape[1]
    H = NUM_HEADS
    f32 = jnp.float32

    # Glue: relative positional embedding projection, Linear(3, 1). Tiny;
    # fused into this jit, scale pre-folded into wp_s / bp_s.
    emb = position_states[STAGE]                                   # (N, M, 3)
    pbias = (emb @ packed["wp_s"].T + packed["bp_s"])[..., 0].astype(f32)  # (N, M)

    vmem = lambda: pl.BlockSpec(memory_space=pltpu.MemorySpace.VMEM)

    out_states, attn_hb = pl.pallas_call(
        _attn_layer_kernel,
        out_shape=(
            jax.ShapeDtypeStruct((B, N, C), f32),
            jax.ShapeDtypeStruct((H * B, N, M), f32),
        ),
        in_specs=[vmem() for _ in range(7)],
        out_specs=(vmem(), vmem()),
    )(input_states.astype(f32), memory_states.astype(f32), pbias,
      packed["wqkv"], packed["wo"], packed["bqkv"], packed["rowp"])

    # kernel emits heads on the leading batch dim; repack in plain XLA
    attn = attn_hb.reshape(H, B, N, M).transpose(1, 0, 2, 3)       # (B, H, N, M)
    return out_states, attn


def reference(input_states, memory_states, position_states, params):
    """Pure-JAX f32 reference matching the PyTorch module (stage>=2, no masks)."""
    B, N, C = input_states.shape
    M = memory_states.shape[1]
    H, c = NUM_HEADS, D_HEAD

    q = input_states @ params["wq"].T + params["bq"]
    k = memory_states @ params["wk"].T + params["bk"]
    v = memory_states @ params["wv"].T + params["bv"]
    q = q.reshape(B, N, H, c).transpose(0, 2, 1, 3)
    k = k.reshape(B, M, H, c).transpose(0, 2, 1, 3)
    v = v.reshape(B, M, H, c).transpose(0, 2, 1, 3)

    p = (position_states[STAGE] @ params["wp"].T + params["bp"])[..., 0]  # (N, M)
    scores = jnp.einsum("bhnc,bhmc->bhnm", q, k)
    scores = (scores + p[None, None]) / (c ** 0.5)
    attn = jax.nn.softmax(scores, axis=-1)
    hidden = jnp.einsum("bhnm,bhmc->bhnc", attn, v)
    hidden = hidden.transpose(0, 2, 1, 3).reshape(B, N, C)

    y = hidden @ params["wo"].T + params["bo"]
    z = y + input_states
    mu = z.mean(-1, keepdims=True)
    var = ((z - mu) ** 2).mean(-1, keepdims=True)
    out = (z - mu) / jnp.sqrt(var + LN_EPS) * params["gamma"] + params["beta"]
    return out, attn


def make_params(key):
    ks = jax.random.split(key, 6)
    C = D_MODEL
    p = {
        "wq": jax.random.normal(ks[0], (C, C), jnp.float32) * 0.1,
        "wk": jax.random.normal(ks[1], (C, C), jnp.float32) * 0.1,
        "wv": jax.random.normal(ks[2], (C, C), jnp.float32) * 0.1,
        "wo": jax.random.normal(ks[3], (C, C), jnp.float32) * 0.1,
        "bq": jnp.full((C,), 0.01, jnp.float32),
        "bk": jnp.full((C,), -0.01, jnp.float32),
        "bv": jnp.full((C,), 0.02, jnp.float32),
        "bo": jnp.full((C,), 0.0, jnp.float32),
        "wp": jax.random.normal(ks[4], (1, 3), jnp.float32) * 0.1,   # Linear(3,1)
        "bp": jnp.zeros((1,), jnp.float32),
        "gamma": jnp.ones((C,), jnp.float32),
        "beta": jnp.zeros((C,), jnp.float32),
    }
    return p


if __name__ == "__main__":
    key = jax.random.PRNGKey(0)
    k_in, k_mem, k_pos, k_par = jax.random.split(key, 4)

    B, N, M, C = 2, 8, 8, D_MODEL
    num_stages = STAGE + 1

    input_states = jax.random.normal(k_in, (B, N, C), jnp.float32)
    memory_states = jax.random.normal(k_mem, (B, M, C), jnp.float32)
    position_states = jax.random.normal(k_pos, (num_stages, N, M, 3), jnp.float32)
    params = make_params(k_par)

    packed = pack_params(params)          # one-time packing, outside the call path

    out, attn = swift_rpe_attention_layer(
        input_states, memory_states, position_states, packed)
    out = jax.block_until_ready(out)
    attn = jax.block_until_ready(attn)

    out_ref, attn_ref = reference(
        input_states, memory_states, position_states, params)

    assert out.shape == (B, N, C) and attn.shape == (B, NUM_HEADS, N, M)
    # bf16 MXU operands + approx reciprocal -> relaxed (but still tight) parity
    assert jnp.allclose(out, out_ref, atol=5e-2, rtol=5e-2), \
        float(jnp.max(jnp.abs(out - out_ref)))
    assert jnp.allclose(attn, attn_ref, atol=2e-2, rtol=2e-2), \
        float(jnp.max(jnp.abs(attn - attn_ref)))

    print("KERNEL_OK")
</pallas_src>

<mosaic_0001>
module attributes {stable_mosaic.version = 11 : i64} {
  func.func @_attn_layer_kernel(%arg0: memref<2x8x32xf32, #tpu.memory_space<vmem>>, %arg1: memref<2x8x32xf32, #tpu.memory_space<vmem>>, %arg2: memref<8x8xf32, #tpu.memory_space<vmem>>, %arg3: memref<32x96xbf16, #tpu.memory_space<vmem>>, %arg4: memref<32x32xbf16, #tpu.memory_space<vmem>>, %arg5: memref<1x96xf32, #tpu.memory_space<vmem>>, %arg6: memref<3x32xf32, #tpu.memory_space<vmem>>, %arg7: memref<2x8x32xf32, #tpu.memory_space<vmem>>, %arg8: memref<8x8x8xf32, #tpu.memory_space<vmem>>) attributes {dimension_semantics = [], scalar_prefetch = 0 : i64, scratch_operands = 0 : i64, tpu.core_type = #tpu.core_type<tc>} {
    %c0 = arith.constant 0 : index
    %c0_0 = arith.constant 0 : index
    %c0_1 = arith.constant 0 : index
    %0 = vector.load %arg0[%c0, %c0_0, %c0_1] : memref<2x8x32xf32, #tpu.memory_space<vmem>>, vector<2x8x32xf32>
    %1 = vector.shape_cast %0 : vector<2x8x32xf32> to vector<16x32xf32>
    %c0_2 = arith.constant 0 : index
    %c0_3 = arith.constant 0 : index
    %c0_4 = arith.constant 0 : index
    %2 = vector.load %arg1[%c0_2, %c0_3, %c0_4] : memref<2x8x32xf32, #tpu.memory_space<vmem>>, vector<2x8x32xf32>
    %3 = vector.shape_cast %2 : vector<2x8x32xf32> to vector<16x32xf32>
    %c0_5 = arith.constant 0 : index
    %c0_6 = arith.constant 0 : index
    %4 = vector.load %arg6[%c0_5, %c0_6] : memref<3x32xf32, #tpu.memory_space<vmem>>, vector<3x32xf32>
    %5 = vector.extract_strided_slice %4 {offsets = [0, 0], sizes = [1, 32], strides = [1, 1]} : vector<3x32xf32> to vector<1x32xf32>
    %6 = vector.extract_strided_slice %4 {offsets = [1, 0], sizes = [1, 32], strides = [1, 1]} : vector<3x32xf32> to vector<1x32xf32>
    %7 = vector.extract_strided_slice %4 {offsets = [2, 0], sizes = [1, 32], strides = [1, 1]} : vector<3x32xf32> to vector<1x32xf32>
    %8 = tpu.concatenate %1, %3 in 0 : vector<16x32xf32>, vector<16x32xf32> -> vector<32x32xf32>
    %9 = arith.truncf %8 : vector<32x32xf32> to vector<32x32xbf16>
    %c0_7 = arith.constant 0 : index
    %c0_8 = arith.constant 0 : index
    %10 = vector.load %arg3[%c0_7, %c0_8] : memref<32x96xbf16, #tpu.memory_space<vmem>>, vector<32x96xbf16>
    %cst = arith.constant dense<0.000000e+00> : vector<32x96xf32>
    %11 = tpu.matmul %9, %10, %cst {dimension_numbers = #tpu.dot_dimension_numbers<[1], [0], [0], [1], [0, 0, 1, 1], [], []>} : vector<32x32xbf16>, vector<32x96xbf16>, vector<32x96xf32> -> vector<32x96xf32>
    %c0_9 = arith.constant 0 : index
    %c0_10 = arith.constant 0 : index
    %12 = vector.load %arg5[%c0_9, %c0_10] : memref<1x96xf32, #tpu.memory_space<vmem>>, vector<1x96xf32>
    %13 = vector.broadcast %12 : vector<1x96xf32> to vector<32x96xf32>
    %14 = arith.addf %11, %13 : vector<32x96xf32>
    %15 = vector.extract_strided_slice %14 {offsets = [0, 0], sizes = [16, 32], strides = [1, 1]} : vector<32x96xf32> to vector<16x32xf32>
    %16 = vector.shape_cast %15 : vector<16x32xf32> to vector<2x8x32xf32>
    %17 = vector.extract_strided_slice %14 {offsets = [16, 32], sizes = [16, 32], strides = [1, 1]} : vector<32x96xf32> to vector<16x32xf32>
    %18 = vector.shape_cast %17 : vector<16x32xf32> to vector<2x8x32xf32>
    %19 = vector.extract_strided_slice %14 {offsets = [16, 64], sizes = [16, 32], strides = [1, 1]} : vector<32x96xf32> to vector<16x32xf32>
    %20 = vector.shape_cast %19 : vector<16x32xf32> to vector<2x8x32xf32>
    %21 = vector.extract_strided_slice %16 {offsets = [0, 0, 0], sizes = [2, 8, 8], strides = [1, 1, 1]} : vector<2x8x32xf32> to vector<2x8x8xf32>
    %22 = vector.extract_strided_slice %16 {offsets = [0, 0, 8], sizes = [2, 8, 8], strides = [1, 1, 1]} : vector<2x8x32xf32> to vector<2x8x8xf32>
    %23 = vector.extract_strided_slice %16 {offsets = [0, 0, 16], sizes = [2, 8, 8], strides = [1, 1, 1]} : vector<2x8x32xf32> to vector<2x8x8xf32>
    %24 = vector.extract_strided_slice %16 {offsets = [0, 0, 24], sizes = [2, 8, 8], strides = [1, 1, 1]} : vector<2x8x32xf32> to vector<2x8x8xf32>
    %25 = tpu.concatenate %21, %22, %23, %24 in 0 : vector<2x8x8xf32>, vector<2x8x8xf32>, vector<2x8x8xf32>, vector<2x8x8xf32> -> vector<8x8x8xf32>
    %26 = vector.extract_strided_slice %18 {offsets = [0, 0, 0], sizes = [2, 8, 8], strides = [1, 1, 1]} : vector<2x8x32xf32> to vector<2x8x8xf32>
    %27 = vector.extract_strided_slice %18 {offsets = [0, 0, 8], sizes = [2, 8, 8], strides = [1, 1, 1]} : vector<2x8x32xf32> to vector<2x8x8xf32>
    %28 = vector.extract_strided_slice %18 {offsets = [0, 0, 16], sizes = [2, 8, 8], strides = [1, 1, 1]} : vector<2x8x32xf32> to vector<2x8x8xf32>
    %29 = vector.extract_strided_slice %18 {offsets = [0, 0, 24], sizes = [2, 8, 8], strides = [1, 1, 1]} : vector<2x8x32xf32> to vector<2x8x8xf32>
    %30 = tpu.concatenate %26, %27, %28, %29 in 0 : vector<2x8x8xf32>, vector<2x8x8xf32>, vector<2x8x8xf32>, vector<2x8x8xf32> -> vector<8x8x8xf32>
    %31 = vector.extract_strided_slice %20 {offsets = [0, 0, 0], sizes = [2, 8, 8], strides = [1, 1, 1]} : vector<2x8x32xf32> to vector<2x8x8xf32>
    %32 = vector.extract_strided_slice %20 {offsets = [0, 0, 8], sizes = [2, 8, 8], strides = [1, 1, 1]} : vector<2x8x32xf32> to vector<2x8x8xf32>
    %33 = vector.extract_strided_slice %20 {offsets = [0, 0, 16], sizes = [2, 8, 8], strides = [1, 1, 1]} : vector<2x8x32xf32> to vector<2x8x8xf32>
    %34 = vector.extract_strided_slice %20 {offsets = [0, 0, 24], sizes = [2, 8, 8], strides = [1, 1, 1]} : vector<2x8x32xf32> to vector<2x8x8xf32>
    %35 = tpu.concatenate %31, %32, %33, %34 in 0 : vector<2x8x8xf32>, vector<2x8x8xf32>, vector<2x8x8xf32>, vector<2x8x8xf32> -> vector<8x8x8xf32>
    %c0_11 = arith.constant 0 : index
    %c0_12 = arith.constant 0 : index
    %36 = vector.load %arg2[%c0_11, %c0_12] : memref<8x8xf32, #tpu.memory_space<vmem>>, vector<8x8xf32>
    %37 = arith.truncf %25 : vector<8x8x8xf32> to vector<8x8x8xbf16>
    %38 = arith.truncf %30 : vector<8x8x8xf32> to vector<8x8x8xbf16>
    "tpu.trace_start"() <{level = 10 : i32, message = "bnc,bmc->bnm"}> : () -> ()
    %cst_13 = arith.constant dense<0.000000e+00> : vector<8x8x8xf32>
    %39 = tpu.matmul %37, %38, %cst_13 {dimension_numbers = #tpu.dot_dimension_numbers<[2], [2], [1], [1], [0, 0, 0, 1, 1, 1], [0], [0]>} : vector<8x8x8xbf16>, vector<8x8x8xbf16>, vector<8x8x8xf32> -> vector<8x8x8xf32>
    "tpu.trace_stop"() : () -> ()
    %40 = vector.shape_cast %36 : vector<8x8xf32> to vector<1x8x8xf32>
    %41 = vector.broadcast %40 : vector<1x8x8xf32> to vector<8x8x8xf32>
    %42 = arith.addf %39, %41 : vector<8x8x8xf32>
    %cst_14 = arith.constant dense<0xFF800000> : vector<8x8xf32>
    %43 = vector.multi_reduction <maximumf>, %42, %cst_14 [2] : vector<8x8x8xf32> to vector<8x8xf32>
    %44 = vector.shape_cast %43 : vector<8x8xf32> to vector<8x8x1xf32>
    %45 = vector.broadcast %44 : vector<8x8x1xf32> to vector<8x8x8xf32>
    %46 = arith.subf %42, %45 : vector<8x8x8xf32>
    %47 = math.exp %46 : vector<8x8x8xf32>
    %cst_15 = arith.constant dense<0.000000e+00> : vector<8x8xf32>
    %48 = vector.multi_reduction <add>, %47, %cst_15 [2] : vector<8x8x8xf32> to vector<8x8xf32>
    %49 = vector.shape_cast %48 : vector<8x8xf32> to vector<8x8x1xf32>
    %50 = tpu.reciprocal %49 {approx = true} : vector<8x8x1xf32> -> vector<8x8x1xf32>
    %51 = vector.broadcast %50 : vector<8x8x1xf32> to vector<8x8x8xf32>
    %52 = arith.mulf %47, %51 : vector<8x8x8xf32>
    %c0_16 = arith.constant 0 : index
    %c0_17 = arith.constant 0 : index
    %c0_18 = arith.constant 0 : index
    %53 = vector.load %arg8[%c0_16, %c0_17, %c0_18] : memref<8x8x8xf32, #tpu.memory_space<vmem>>, vector<8x8x8xf32>
    tpu.vector_store %arg8[%c0_16, %c0_17, %c0_18], %52 {strides = array<i32>} : memref<8x8x8xf32, #tpu.memory_space<vmem>>, vector<8x8x8xf32>,
    %54 = arith.truncf %52 : vector<8x8x8xf32> to vector<8x8x8xbf16>
    %55 = arith.truncf %35 : vector<8x8x8xf32> to vector<8x8x8xbf16>
    "tpu.trace_start"() <{level = 10 : i32, message = "bnm,bmc->bnc"}> : () -> ()
    %cst_19 = arith.constant dense<0.000000e+00> : vector<8x8x8xf32>
    %56 = tpu.matmul %54, %55, %cst_19 {dimension_numbers = #tpu.dot_dimension_numbers<[2], [1], [1], [2], [0, 0, 0, 1, 1, 2], [0], [0]>} : vector<8x8x8xbf16>, vector<8x8x8xbf16>, vector<8x8x8xf32> -> vector<8x8x8xf32>
    "tpu.trace_stop"() : () -> ()
    %57 = vector.extract_strided_slice %56 {offsets = [0, 0, 0], sizes = [2, 8, 8], strides = [1, 1, 1]} : vector<8x8x8xf32> to vector<2x8x8xf32>
    %58 = vector.extract_strided_slice %56 {offsets = [2, 0, 0], sizes = [2, 8, 8], strides = [1, 1, 1]} : vector<8x8x8xf32> to vector<2x8x8xf32>
    %59 = vector.extract_strided_slice %56 {offsets = [4, 0, 0], sizes = [2, 8, 8], strides = [1, 1, 1]} : vector<8x8x8xf32> to vector<2x8x8xf32>
    %60 = vector.extract_strided_slice %56 {offsets = [6, 0, 0], sizes = [2, 8, 8], strides = [1, 1, 1]} : vector<8x8x8xf32> to vector<2x8x8xf32>
    %61 = tpu.concatenate %57, %58, %59, %60 in 2 : vector<2x8x8xf32>, vector<2x8x8xf32>, vector<2x8x8xf32>, vector<2x8x8xf32> -> vector<2x8x32xf32>
    %62 = vector.shape_cast %61 : vector<2x8x32xf32> to vector<16x32xf32>
    %63 = arith.truncf %62 : vector<16x32xf32> to vector<16x32xbf16>
    %c0_20 = arith.constant 0 : index
    %c0_21 = arith.constant 0 : index
    %64 = vector.load %arg4[%c0_20, %c0_21] : memref<32x32xbf16, #tpu.memory_space<vmem>>, vector<32x32xbf16>
    %cst_22 = arith.constant dense<0.000000e+00> : vector<16x32xf32>
    %65 = tpu.matmul %63, %64, %cst_22 {dimension_numbers = #tpu.dot_dimension_numbers<[1], [0], [0], [1], [0, 0, 1, 1], [], []>} : vector<16x32xbf16>, vector<32x32xbf16>, vector<16x32xf32> -> vector<16x32xf32>
    %66 = vector.broadcast %5 : vector<1x32xf32> to vector<16x32xf32>
    %67 = arith.addf %65, %66 : vector<16x32xf32>
    %68 = arith.addf %67, %1 : vector<16x32xf32>
    %cst_23 = arith.constant dense<0.000000e+00> : vector<16xf32>
    %69 = vector.multi_reduction <add>, %68, %cst_23 [1] : vector<16x32xf32> to vector<16xf32>
    %70 = vector.shape_cast %69 : vector<16xf32> to vector<16x1xf32>
    %cst_24 = arith.constant 3.200000e+01 : f32
    %71 = vector.broadcast %cst_24 : f32 to vector<16x1xf32>
    %72 = arith.divf %70, %71 : vector<16x1xf32>
    %73 = vector.broadcast %72 : vector<16x1xf32> to vector<16x32xf32>
    %74 = arith.subf %68, %73 : vector<16x32xf32>
    %75 = arith.mulf %74, %74 : vector<16x32xf32>
    %cst_25 = arith.constant dense<0.000000e+00> : vector<16xf32>
    %76 = vector.multi_reduction <add>, %75, %cst_25 [1] : vector<16x32xf32> to vector<16xf32>
    %77 = vector.shape_cast %76 : vector<16xf32> to vector<16x1xf32>
    %cst_26 = arith.constant 3.200000e+01 : f32
    %78 = vector.broadcast %cst_26 : f32 to vector<16x1xf32>
    %79 = arith.divf %77, %78 : vector<16x1xf32>
    %80 = vector.broadcast %72 : vector<16x1xf32> to vector<16x32xf32>
    %81 = arith.subf %68, %80 : vector<16x32xf32>
    %cst_27 = arith.constant 9.99999974E-6 : f32
    %82 = vector.broadcast %cst_27 : f32 to vector<16x1xf32>
    %83 = arith.addf %79, %82 : vector<16x1xf32>
    %84 = math.rsqrt %83 : vector<16x1xf32>
    %85 = vector.broadcast %84 : vector<16x1xf32> to vector<16x32xf32>
    %86 = arith.mulf %81, %85 : vector<16x32xf32>
    %87 = vector.broadcast %6 : vector<1x32xf32> to vector<16x32xf32>
    %88 = arith.mulf %86, %87 : vector<16x32xf32>
    %89 = vector.broadcast %7 : vector<1x32xf32> to vector<16x32xf32>
    %90 = arith.addf %88, %89 : vector<16x32xf32>
    %91 = vector.shape_cast %90 : vector<16x32xf32> to vector<2x8x32xf32>
    %c0_28 = arith.constant 0 : index
    %c0_29 = arith.constant 0 : index
    %c0_30 = arith.constant 0 : index
    %92 = vector.load %arg7[%c0_28, %c0_29, %c0_30] : memref<2x8x32xf32, #tpu.memory_space<vmem>>, vector<2x8x32xf32>
    tpu.vector_store %arg7[%c0_28, %c0_29, %c0_30], %91 {strides = array<i32>} : memref<2x8x32xf32, #tpu.memory_space<vmem>>, vector<2x8x32xf32>,
    return
  }
}

</mosaic_0001>

<bundles_post_ra>
// kernel: swift_rpe_attention_layer.1
= control target key start
LH: loop header
LB: loop body
LE: loop exit
PB: predicated region body
PF: predicated region fallthrough
CT: control target
= control target key end

     0   :  { %vm60_vm0 = vcmask 261120   ;;  %s1854_s0 = inlined_call_operand.vmem [shape: f32[2,8,32], index: 0, kind: input, shape index: {}]   ;;  %s1855_s1 = inlined_call_operand.vmem [shape: f32[2,8,32], index: 1, kind: input, shape index: {}]   ;;  %s1856_s2 = inlined_call_operand.vmem [shape: f32[8,8], index: 2, kind: input, shape index: {}]   ;;  %s1857_s3 = inlined_call_operand.vmem [shape: bf16[32,96], index: 3, kind: input, shape index: {}]   ;;  %s1858_s4 = inlined_call_operand.vmem [shape: bf16[32,32], index: 4, kind: input, shape index: {}]   ;;  %s1859_s5 = inlined_call_operand.vmem [shape: f32[1,96], index: 5, kind: input, shape index: {}]   ;;  %s1860_s6 = inlined_call_operand.vmem [shape: f32[3,32], index: 6, kind: input, shape index: {}]   ;;  %s1861_s7 = inlined_call_operand.hbm [shape: f32[2,8,32], index: 7, kind: output, shape index: {0}]   ;;  %s1862_s8 = inlined_call_operand.vmem [shape: f32[8,8,8], index: 8, kind: output, shape index: {1}]  }
   0x1   :  { %v1447_v0 = vld [vmem:[%s1857_s3] sm:$0xff]   ;;  %v1448_v1 = vld [vmem:[%s1857_s3 + $0x8] sm:$0xff]  }
   0x2   :  { %1278 = vmatprep.subr.bf16.mxu0 %v1447_v0  ;;  %v1577_v2 = vld [vmem:[%s1854_s0] sm:$0xff]  ;;  %v1582_v3 = vld [vmem:[%s1854_s0 + $0x8] sm:$0xff] }
   0x3   :  { %v32_v4 = vld [vmem:[%s1855_s1] sm:$0xff]  ;;  %1279 = vmatpush3.bf16.msra.mxu0 %v1447_v0  ;;  %v35_v5 = vpack.c.bf16 %v1582_v3, %v1577_v2  ;;  %v33_v6 = vld [vmem:[%s1855_s1 + $0x8] sm:$0xff] }
   0x4   :  { %1280 = vmatprep.subr.bf16.mxu0 %v1448_v1 }
   0x5   :  { %14 = vsyncpa [#allocation3], 0  ;;  %1282 = vmatprep.mubr.msk.bf16.mxu0 %vm60_vm0, %v35_v5  ;;  %v36_v7 = vpack.c.bf16 %v33_v6, %v32_v4  ;;  %v1511_v8 = vmov 0.0   ;;  %v1215_v9 = vld [vmem:[%s1859_s5] ss:$0 sm:$0xff]  ;;  %vm1512_vm1 = vmmov 0  }
   0x6   :  { %1286 = vmatprep.subr.bf16.mxu1 %v1511_v8  ;;  %1288 = vmatprep.mubr.msk.bf16.mxu1 %vm1512_vm1, %v1511_v8  ;;  %s1513_s1 = smov 104   ;;  %s1514_s5 = smov 120   ;;  %vm176_vm2 = vcmask 64512   ;;  %vm675_vm3 = vcmask 1043456   ;;  %vm1081_vm4 = vcmask 130048   ;;  %vm1084_vm5 = vcmask 195584  }
   0x7   :  { %1281 = vmatpush3.bf16.msra.mxu0 %v1448_v1  ;;  %s1515_s17 = smov 96   ;;  %s1516_s18 = smov 112  }
   0x8   :  { %1292 = vmatprep.subr.bf16.mxu0 %v1511_v8  ;;  %s1517_s19 = smov 64  }
   0xa   :  { %1283 = vmatmul.mubr.msk.bf16.vlgmr.msra.gmra.mrb[0].mxu0 %vm60_vm0, %v36_v7 }
   0xb   :  { %1294 = vmatprep.mubr.msk.bf16.mxu0 %vm1512_vm1, %v1511_v8 }
  0xdd   :  { %v1284_v10 = vpop.f32.mrb[0].mxu0 }
  0xde   :  { %v101_v11 = vpop.f32.mrb[1].mxu0  ;;  %v110_v14 = vadd.f32 %v1284_v10, %v1215_v9 }
  0xdf   :  { %v102_v12 = vadd.f32 %v1215_v9, %v101_v11  ;;  %v1285_v13 = vpop.f32.mrb[2].mxu0  ;;  %v156_v11 = vld [vmem:[%s1856_s2] sm:$0xff] }
  0xe0   :  { %v113_v15 = vadd.f32 %v1285_v13, %v1215_v9  ;;  %v104_v16 = vpop.f32.mrb[3].mxu0  ;;  %v165_v20 = vpack.c.bf16 %v110_v14, %v110_v14 }
  0xe1   :  { %v105_v17 = vadd.f32 %v1215_v9, %v104_v16  ;;  %v157_v39 = vpack.c.bf16 %v102_v12, %v102_v12 }
  0xe2   :  { %v1412_v18 = vpack.i.bf16 %v113_v15, %v110_v14  ;;  %v1606_v21 = vpack.c.bf16 %v113_v15, %v113_v15 }
  0xe3   :  { %v1417_v19 = vpack.i.bf16 %v105_v17, %v102_v12  ;;  %v158_v40 = vpack.c.bf16 %v105_v17, %v105_v17 }
  0xe4   :  { %1413 = vrot.lane.b32.xlu1 %v1412_v18, %s1513_s1  ;;  %1403 = vrot.lane.b32.xlu0 %v1412_v18, %s1514_s5 }
  0xe8   :  { %174 = vrot.lane.b32.xlu1 %v165_v20, %s1515_s17  ;;  %1408 = vrot.lane.b32.xlu0 %v1412_v18, %s1516_s18 }
  0xec   :  { %224 = vrot.lane.b32.xlu0 %v1606_v21, %s1515_s17 }
 0x156   :  { %v1414_v22 = vpop.permute.xlu1 %1413  ;;  %v1404_v23 = vpop.permute.xlu0 %1403 }
 0x157   :  { %v1406_v24 = vunpack.i.h.bf16 %v1404_v23  ;;  %v1405_v25 = vunpack.i.l.bf16 %v1404_v23  ;;  %v1416_v36 = vunpack.i.h.bf16 %v1414_v22  ;;  %v1415_v38 = vunpack.i.l.bf16 %v1414_v22 }
 0x159   :  { %v1610_v26 = vpack.c.bf16 %v1406_v24, %v1406_v24  ;;  %v1612_v27 = vpack.c.bf16 %v1405_v25, %v1405_v25  ;;  %v1632_v41 = vpack.c.bf16 %v1416_v36, %v1416_v36  ;;  %v1636_v42 = vpack.c.bf16 %v1415_v38, %v1415_v38 }
 0x15a   :  { %v175_v28 = vpop.permute.xlu1 %174  ;;  %v1409_v29 = vpop.permute.xlu0 %1408 }
 0x15b   :  { %v1410_v30 = vunpack.i.l.bf16 %v1409_v29  ;;  %273 = vrot.lane.b32.xlu1 %v1612_v27, %s1515_s17  ;;  %322 = vrot.lane.b32.xlu0 %v1610_v26, %s1515_s17  ;;  %v181_v31 = vsel %vm176_vm2, %v175_v28, 0  ;;  %v1411_v32 = vunpack.i.h.bf16 %v1409_v29 }
 0x15c   :  { %1287 = vmatpush3.bf16.xpose.msra.mxu1 %v181_v31 }
 0x15d   :  { %v1619_v33 = vpack.c.bf16 %v1410_v30, %v1410_v30  ;;  %1298 = vmatprep.subr.bf16.mxu1 %v1511_v8  ;;  %v1625_v37 = vpack.c.bf16 %v1411_v32, %v1411_v32 }
 0x15e   :  { %v225_v34 = vpop.permute.xlu0 %224 }
 0x15f   :  { %v230_v35 = vsel %vm176_vm2, %v225_v34, 0  ;;  %371 = vrot.lane.b32.xlu0 %v1619_v33, %s1515_s17  ;;  %1418 = vrot.lane.b32.xlu1 %v1417_v19, %s1514_s5  ;;  %s1520_s5 = smov 24  }
 0x160   :  { %1293 = vmatpush3.bf16.xpose.msra.mxu0 %v230_v35 }
 0x161   :  { %1304 = vmatprep.subr.bf16.mxu0 %v1511_v8 }
 0x163   :  { %1423 = vrot.lane.b32.xlu0 %v1417_v19, %s1516_s18  ;;  %420 = vrot.lane.b32.xlu1 %v1625_v37, %s1515_s17 }
 0x164   :  { %1289 = vmatmul.mubr.msk.bf16.vlgmr.msra.gmra.mrb[0].mxu1 %vm176_vm2, %v157_v39 }
 0x165   :  { %1300 = vmatprep.mubr.msk.bf16.mxu1 %vm1512_vm1, %v1511_v8 }
 0x167   :  { %1295 = vmatmul.mubr.msk.bf16.vlgmr.msra.gmra.mrb[4].mxu0 %vm176_vm2, %v158_v40  ;;  %518 = vrot.lane.b32.xlu0 %v1632_v41, %s1515_s17 }
 0x168   :  { %469 = vrot.lane.b32.xlu1 %v1636_v42, %s1515_s17  ;;  %1306 = vmatprep.mubr.msk.bf16.mxu0 %vm1512_vm1, %v1511_v8 }
 0x16c   :  { %1428 = vrot.lane.b32.xlu1 %v1417_v19, %s1513_s1  ;;  %s1519_s1 = smov 16  }
 0x170   :  { %670 = vrot.lane.b32.xlu1 %v165_v20, %s1517_s19 }
 0x1cd   :  { %v274_v43 = vpop.permute.xlu1 %273  ;;  %v323_v44 = vpop.permute.xlu0 %322 }
 0x1ce   :  { %v279_v45 = vsel %vm176_vm2, %v274_v43, 0  ;;  %v328_v46 = vsel %vm176_vm2, %v323_v44, 0 }
 0x1cf   :  { %1299 = vmatpush3.bf16.xpose.msra.mxu1 %v279_v45  ;;  %1305 = vmatpush3.bf16.xpose.msra.mxu0 %v328_v46 }
 0x1d0   :  { %1310 = vmatprep.subr.bf16.mxu1 %v1511_v8  ;;  %1316 = vmatprep.subr.bf16.mxu0 %v1511_v8 }
 0x1d1   :  { %v372_v47 = vpop.permute.xlu0 %371  ;;  %v1419_v48 = vpop.permute.xlu1 %1418 }
 0x1d2   :  { %v1421_v49 = vunpack.i.h.bf16 %v1419_v48  ;;  %v1420_v50 = vunpack.i.l.bf16 %v1419_v48  ;;  %v377_v55 = vsel %vm176_vm2, %v372_v47, 0 }
 0x1d4   :  { %v160_v51 = vpack.c.bf16 %v1421_v49, %v1421_v49  ;;  %v159_v52 = vpack.c.bf16 %v1420_v50, %v1420_v50 }
 0x1d5   :  { %v1424_v53 = vpop.permute.xlu0 %1423  ;;  %v421_v54 = vpop.permute.xlu1 %420 }
 0x1d6   :  { %v426_v56 = vsel %vm176_vm2, %v421_v54, 0  ;;  %1301 = vmatmul.mubr.msk.bf16.vlgmr.msra.gmra.mrb[4].mxu1 %vm176_vm2, %v159_v52  ;;  %1307 = vmatmul.mubr.msk.bf16.vlgmr.msra.gmra.mrb[8].mxu0 %vm176_vm2, %v160_v51  ;;  %v1426_v57 = vunpack.i.h.bf16 %v1424_v53  ;;  %v1425_v58 = vunpack.i.l.bf16 %v1424_v53 }
 0x1d7   :  { %1311 = vmatpush3.bf16.xpose.msra.mxu1 %v377_v55  ;;  %1317 = vmatpush3.bf16.xpose.msra.mxu0 %v426_v56 }
 0x1d8   :  { %1312 = vmatprep.mubr.msk.bf16.mxu1 %vm1512_vm1, %v1511_v8  ;;  %1318 = vmatprep.mubr.msk.bf16.mxu0 %vm1512_vm1, %v1511_v8  ;;  %v162_v61 = vpack.c.bf16 %v1426_v57, %v1426_v57  ;;  %v161_v62 = vpack.c.bf16 %v1425_v58, %v1425_v58 }
 0x1d9   :  { %1322 = vmatprep.subr.bf16.mxu1 %v1511_v8  ;;  %1328 = vmatprep.subr.bf16.mxu0 %v1511_v8  ;;  %v519_v60 = vpop.permute.xlu0 %518 }
 0x1da   :  { %v470_v59 = vpop.permute.xlu1 %469  ;;  %v524_v63 = vsel %vm176_vm2, %v519_v60, 0 }
 0x1db   :  { %v475_v0 = vsel %vm176_vm2, %v470_v59, 0 }
 0x1de   :  { %v1429_v1 = vpop.permute.xlu1 %1428  ;;  %1313 = vmatmul.mubr.msk.bf16.vlgmr.msra.gmra.mrb[8].mxu1 %vm176_vm2, %v161_v62  ;;  %1319 = vmatmul.mubr.msk.bf16.vlgmr.msra.gmra.mrb[12].mxu0 %vm176_vm2, %v162_v61 }
 0x1df   :  { %1323 = vmatpush3.bf16.xpose.msra.mxu1 %v475_v0  ;;  %1329 = vmatpush3.bf16.xpose.msra.mxu0 %v524_v63  ;;  %v1431_v4 = vunpack.i.h.bf16 %v1429_v1  ;;  %v1430_v5 = vunpack.i.l.bf16 %v1429_v1 }
 0x1e0   :  { %1324 = vmatprep.mubr.msk.bf16.mxu1 %vm1512_vm1, %v1511_v8  ;;  %1330 = vmatprep.mubr.msk.bf16.mxu0 %vm1512_vm1, %v1511_v8 }
 0x1e1   :  { %1334 = vmatprep.subr.bf16.mxu1 %v1511_v8  ;;  %1340 = vmatprep.subr.bf16.mxu0 %v1511_v8  ;;  %v164_v7 = vpack.c.bf16 %v1431_v4, %v1431_v4  ;;  %v163_v9 = vpack.c.bf16 %v1430_v5, %v1430_v5 }
 0x1e2   :  { %v671_v6 = vpop.permute.xlu1 %670 }
 0x1e3   :  { %v677_v10 = vsel %vm675_vm3, %v671_v6, 0 }
 0x1e6   :  { %1325 = vmatmul.mubr.msk.bf16.vlgmr.msra.gmra.mrb[12].mxu1 %vm176_vm2, %v163_v9  ;;  %1331 = vmatmul.mubr.msk.bf16.vlgmr.msra.gmra.mrb[16].mxu0 %vm176_vm2, %v164_v7 }
 0x1e7   :  { %1335 = vmatpush3.bf16.msra.mxu1 %v677_v10  ;;  %1342 = vmatprep.mubr.msk.bf16.mxu0 %vm1512_vm1, %v1511_v8 }
 0x1e8   :  { %1336 = vmatprep.mubr.msk.bf16.mxu1 %vm1512_vm1, %v1511_v8  ;;  %1346 = vmatprep.subr.bf16.mxu1 %v1511_v8 }
 0x237   :  { %v217_v12 = vpop.f32.mrb[0].mxu1 }
 0x238   :  { %v1682_v13 = vadd.f32 %v217_v12, %v156_v11  ;;  %v1290_v14 = vpop.f32.mrb[1].mxu1 }
 0x239   :  { %v220_v15 = vpop.f32.mrb[2].mxu1 }
 0x23a   :  { %v1291_v16 = vpop.f32.mrb[3].mxu1  ;;  %v266_v17 = vpop.f32.mrb[4].mxu0  ;;  %v566_v18 = vsel %vm176_vm2, %v1682_v13, -inf }
 0x23b   :  { %v267_v19 = vadd.f32 %v266_v17, %v156_v11  ;;  %567 = vmax.xlane.f32.xlu0 %v566_v18  ;;  %v1296_v20 = vpop.f32.mrb[5].mxu0 }
 0x23c   :  { %v269_v22 = vpop.f32.mrb[6].mxu0 }
 0x23d   :  { %v1297_v23 = vpop.f32.mrb[7].mxu0  ;;  %v569_v24 = vsel %vm176_vm2, %v267_v19, -inf }
 0x23e   :  { %570 = vmax.xlane.f32.xlu1 %v569_v24 }
 0x2a9   :  { %v315_v25 = vpop.f32.mrb[4].mxu1  ;;  %v364_v28 = vpop.f32.mrb[8].mxu0 }
 0x2aa   :  { %v316_v29 = vadd.f32 %v315_v25, %v156_v11  ;;  %v1302_v30 = vpop.f32.mrb[5].mxu1  ;;  %v1308_v31 = vpop.f32.mrb[9].mxu0  ;;  %v365_v35 = vadd.f32 %v364_v28, %v156_v11 }
 0x2ab   :  { %v318_v32 = vpop.f32.mrb[6].mxu1  ;;  %v367_v34 = vpop.f32.mrb[10].mxu0 }
 0x2ac   :  { %v1303_v36 = vpop.f32.mrb[7].mxu1  ;;  %v1309_v38 = vpop.f32.mrb[11].mxu0  ;;  %v572_v39 = vsel %vm176_vm2, %v316_v29, -inf  ;;  %v575_v40 = vsel %vm176_vm2, %v365_v35, -inf }
 0x2ad   :  { %573 = vmax.xlane.f32.xlu0 %v572_v39 }
 0x2b1   :  { %v462_v43 = vpop.f32.mrb[12].mxu0  ;;  %576 = vmax.xlane.f32.xlu0 %v575_v40  ;;  %v413_v44 = vpop.f32.mrb[8].mxu1 }
 0x2b2   :  { %v1689_v45 = vadd.f32 %v462_v43, %v156_v11  ;;  %v1691_v46 = vadd.f32 %v413_v44, %v156_v11  ;;  %v1314_v47 = vpop.f32.mrb[9].mxu1  ;;  %v1320_v48 = vpop.f32.mrb[13].mxu0 }
 0x2b3   :  { %v416_v49 = vpop.f32.mrb[10].mxu1  ;;  %v465_v50 = vpop.f32.mrb[14].mxu0 }
 0x2b4   :  { %v1315_v51 = vpop.f32.mrb[11].mxu1  ;;  %v1321_v52 = vpop.f32.mrb[15].mxu0  ;;  %v581_v53 = vsel %vm176_vm2, %v1689_v45, -inf  ;;  %v578_v54 = vsel %vm176_vm2, %v1691_v46, -inf }
 0x2b5   :  { %582 = vmax.xlane.f32.xlu0 %v581_v53  ;;  %579 = vmax.xlane.f32.xlu1 %v578_v54 }
 0x2b9   :  { %v511_v55 = vpop.f32.mrb[12].mxu1  ;;  %v560_v56 = vpop.f32.mrb[16].mxu0 }
 0x2ba   :  { %v512_v57 = vadd.f32 %v511_v55, %v156_v11  ;;  %v561_v58 = vadd.f32 %v560_v56, %v156_v11  ;;  %v1326_v59 = vpop.f32.mrb[13].mxu1  ;;  %v1332_v60 = vpop.f32.mrb[17].mxu0 }
 0x2bb   :  { %v514_v61 = vpop.f32.mrb[14].mxu1  ;;  %v563_v62 = vpop.f32.mrb[18].mxu0 }
 0x2bc   :  { %v1327_v63 = vpop.f32.mrb[15].mxu1  ;;  %v1333_v0 = vpop.f32.mrb[19].mxu0  ;;  %v587_v1 = vsel %vm176_vm2, %v561_v58, -inf  ;;  %v584_v4 = vsel %vm176_vm2, %v512_v57, -inf }
 0x2bd   :  { %588 = vmax.xlane.f32.xlu0 %v587_v1  ;;  %585 = vmax.xlane.f32.xlu1 %v584_v4 }
 0x2c8   :  { %v568_v7 = vpop.xlane.xlu0 %567 }
 0x2c9   :  { %v590_v9 = vsub.f32 %v1682_v13, %v568_v7 }
 0x2cb   :  { %v571_v5 = vpop.xlane.xlu1 %570  ;;  %v598_v11 = vmul.f32 1.442695, %v590_v9 }
 0x2cc   :  { %v591_v6 = vsub.f32 %v267_v19, %v571_v5 }
 0x2ce   :  { %767 = vrot.lane.b32.xlu1 %v1612_v27, %s1517_s19  ;;  %v600_v10 = vmul.f32 1.442695, %v591_v6 }
 0x2d0   :  { %1451 = vpow2.f32 %v600_v10 }
 0x2d1   :  { %1453 = vpow2.f32 %v598_v11 }
 0x2d2   :  { %815 = vrot.lane.b32.xlu1 %v1610_v26, %s1517_s19 }
 0x2d3   :  { %719 = vrot.lane.b32.xlu0 %v1606_v21, %s1517_s19 }
 0x2da   :  { %v1452_v12 = vpop.eup %1451 }
 0x2db   :  { %v617_v14 = vsel %vm176_vm2, %v1452_v12, 0.0  ;;  %v1707_v15 = vpop.eup %1453 }
 0x2dc   :  { %v614_v26 = vsel %vm176_vm2, %v1707_v15, 0.0 }
 0x2f2   :  { %618 = vadd.xlane.f32.xlu0 %v617_v14 }
 0x2f6   :  { %615 = vadd.xlane.f32.xlu1 %v614_v26 }
 0x33a   :  { %v574_v21 = vpop.xlane.xlu0 %573 }
 0x33b   :  { %v592_v27 = vsub.f32 %v316_v29, %v574_v21 }
 0x33d   :  { %v602_v16 = vmul.f32 1.442695, %v592_v27 }
 0x33e   :  { %v577_v17 = vpop.xlane.xlu0 %576 }
 0x33f   :  { %1455 = vpow2.f32 %v602_v16  ;;  %v593_v13 = vsub.f32 %v365_v35, %v577_v17 }
 0x341   :  { %v604_v18 = vmul.f32 1.442695, %v593_v13 }
 0x342   :  { %v583_v19 = vpop.xlane.xlu0 %582  ;;  %v580_v30 = vpop.xlane.xlu1 %579 }
 0x343   :  { %1457 = vpow2.f32 %v604_v18  ;;  %v594_v31 = vsub.f32 %v1691_v46, %v580_v30  ;;  %v595_v34 = vsub.f32 %v1689_v45, %v583_v19 }
 0x345   :  { %v606_v35 = vmul.f32 1.442695, %v594_v31  ;;  %v608_v38 = vmul.f32 1.442695, %v595_v34 }
 0x347   :  { %1459 = vpow2.f32 %v606_v35 }
 0x348   :  { %1461 = vpow2.f32 %v608_v38 }
 0x349   :  { %v1711_v20 = vpop.eup %1455 }
 0x34a   :  { %v589_v22 = vpop.xlane.xlu0 %588  ;;  %v620_v23 = vsel %vm176_vm2, %v1711_v20, 0.0  ;;  %v586_v32 = vpop.xlane.xlu1 %585 }
 0x34b   :  { %621 = vadd.xlane.f32.xlu1 %v620_v23  ;;  %v596_v36 = vsub.f32 %v512_v57, %v586_v32  ;;  %v597_v39 = vsub.f32 %v561_v58, %v589_v22 }
 0x34d   :  { %v1715_v24 = vpop.eup %1457  ;;  %v610_v40 = vmul.f32 1.442695, %v596_v36  ;;  %v612_v43 = vmul.f32 1.442695, %v597_v39 }
 0x34e   :  { %v720_v25 = vpop.permute.xlu0 %719  ;;  %v623_v28 = vsel %vm176_vm2, %v1715_v24, 0.0  ;;  %v768_v44 = vpop.permute.xlu1 %767 }
 0x34f   :  { %v725_v29 = vsel %vm675_vm3, %v720_v25, 0  ;;  %624 = vadd.xlane.f32.xlu0 %v623_v28  ;;  %1463 = vpow2.f32 %v610_v40  ;;  %v773_v61 = vsel %vm675_vm3, %v768_v44, 0 }
 0x350   :  { %1341 = vmatpush3.bf16.msra.mxu0 %v725_v29  ;;  %1465 = vpow2.f32 %v612_v43 }
 0x351   :  { %1352 = vmatprep.subr.bf16.mxu0 %v1511_v8 }
 0x352   :  { %v816_v47 = vpop.permute.xlu1 %815 }
 0x353   :  { %v821_v58 = vsel %vm675_vm3, %v816_v47, 0 }
 0x35c   :  { %911 = vrot.lane.b32.xlu1 %v1625_v37, %s1517_s19  ;;  %v1727_v37 = vpop.eup %1459 }
 0x35d   :  { %v626_v45 = vsel %vm176_vm2, %v1727_v37, 0.0 }
 0x365   :  { %863 = vrot.lane.b32.xlu0 %v1619_v33, %s1517_s19  ;;  %v1729_v33 = vpop.eup %1461 }
 0x366   :  { %v1733_v48 = vpop.eup %1463  ;;  %v629_v50 = vsel %vm176_vm2, %v1729_v33, 0.0 }
 0x367   :  { %v632_v51 = vsel %vm176_vm2, %v1733_v48, 0.0  ;;  %v1739_v52 = vpop.eup %1465 }
 0x368   :  { %v635_v53 = vsel %vm176_vm2, %v1739_v52, 0.0 }
 0x37f   :  { %v619_v46 = vpop.xlane.xlu0 %618 }
 0x380   :  { %1467 = vrcp.f32 %v619_v46  ;;  %627 = vadd.xlane.f32.xlu1 %v626_v45 }
 0x383   :  { %v616_v49 = vpop.xlane.xlu1 %615 }
 0x384   :  { %1469 = vrcp.f32 %v616_v49  ;;  %630 = vadd.xlane.f32.xlu0 %v629_v50  ;;  %633 = vadd.xlane.f32.xlu1 %v632_v51  ;;  %v1449_v50 = vld [vmem:[%s1858_s4] sm:$0xff]  }
 0x388   :  { %636 = vadd.xlane.f32.xlu0 %v635_v53 }
 0x38a   :  { %v1468_v54 = vpop.eup %1467 }
 0x38b   :  { %v647_v55 = vmul.f32 %v1468_v54, %v1452_v12 }
 0x38d   :  { %655 = vst.msk [vmem:[%s1862_s8 + $0x8] sm:$0xff] %vm176_vm2, %v647_v55  ;;  %v663_v56 = vpack.c.bf16 %v647_v55, %v647_v55  ;;  %v1450_v55 = vld [vmem:[%s1858_s4 + $0x8] sm:$0xff]  }
 0x38e   :  { %v1470_v57 = vpop.eup %1469 }
 0x38f   :  { %v646_v59 = vmul.f32 %v1470_v57, %v1707_v15  ;;  %1343 = vmatmul.mubr.msk.bf16.vlgmr.msra.gmra.mrb[20].mxu0 %vm176_vm2, %v663_v56 }
 0x390   :  { %1353 = vmatpush3.bf16.msra.mxu0 %v821_v58  ;;  %1354 = vmatprep.mubr.msk.bf16.mxu0 %vm1512_vm1, %v1511_v8 }
 0x391   :  { %654 = vst.msk [vmem:[%s1862_s8] sm:$0xff] %vm176_vm2, %v646_v59  ;;  %v662_v60 = vpack.c.bf16 %v646_v59, %v646_v59  ;;  %1364 = vmatprep.subr.bf16.mxu0 %v1511_v8 }
 0x393   :  { %1337 = vmatmul.mubr.msk.bf16.vlgmr.msra.gmra.mrb[16].mxu1 %vm176_vm2, %v662_v60 }
 0x394   :  { %1347 = vmatpush3.bf16.msra.mxu1 %v773_v61  ;;  %1348 = vmatprep.mubr.msk.bf16.mxu1 %vm1512_vm1, %v1511_v8 }
 0x395   :  { %1007 = vrot.lane.b32.xlu1 %v1632_v41, %s1517_s19  ;;  %1358 = vmatprep.subr.bf16.mxu1 %v1511_v8 }
 0x39e   :  { %959 = vrot.lane.b32.xlu0 %v1636_v42, %s1517_s19 }
 0x3d8   :  { %v622_v62 = vpop.xlane.xlu1 %621 }
 0x3d9   :  { %1471 = vrcp.f32 %v622_v62 }
 0x3dc   :  { %v625_v63 = vpop.xlane.xlu0 %624  ;;  %v912_v42 = vpop.permute.xlu1 %911 }
 0x3dd   :  { %1473 = vrcp.f32 %v625_v63  ;;  %v917_v10 = vsel %vm675_vm3, %v912_v42, 0 }
 0x3e0   :  { %v864_v4 = vpop.permute.xlu0 %863 }
 0x3e1   :  { %v869_v7 = vsel %vm675_vm3, %v864_v4, 0 }
 0x3e3   :  { %v1472_v0 = vpop.eup %1471 }
 0x3e4   :  { %v648_v1 = vmul.f32 %v1472_v0, %v1711_v20 }
 0x3e6   :  { %656 = vst.msk [vmem:[%s1862_s8 + $0x10] sm:$0xff] %vm176_vm2, %v648_v1  ;;  %v664_v5 = vpack.c.bf16 %v648_v1, %v648_v1 }
 0x3e7   :  { %v1474_v41 = vpop.eup %1473 }
 0x3e8   :  { %v649_v6 = vmul.f32 %v1474_v41, %v1715_v24  ;;  %1349 = vmatmul.mubr.msk.bf16.vlgmr.msra.gmra.mrb[20].mxu1 %vm176_vm2, %v664_v5 }
 0x3e9   :  { %1359 = vmatpush3.bf16.msra.mxu1 %v869_v7  ;;  %1360 = vmatprep.mubr.msk.bf16.mxu1 %vm1512_vm1, %v1511_v8 }
 0x3ea   :  { %657 = vst.msk [vmem:[%s1862_s8 + $0x18] sm:$0xff] %vm176_vm2, %v649_v6  ;;  %v665_v9 = vpack.c.bf16 %v649_v6, %v649_v6  ;;  %1370 = vmatprep.subr.bf16.mxu1 %v1511_v8 }
 0x3ec   :  { %1355 = vmatmul.mubr.msk.bf16.vlgmr.msra.gmra.mrb[24].mxu0 %vm176_vm2, %v665_v9 }
 0x3ed   :  { %1365 = vmatpush3.bf16.msra.mxu0 %v917_v10  ;;  %1366 = vmatprep.mubr.msk.bf16.mxu0 %vm1512_vm1, %v1511_v8 }
 0x3ee   :  { %1376 = vmatprep.subr.bf16.mxu0 %v1511_v8 }
 0x40d   :  { %v628_v11 = vpop.xlane.xlu1 %627 }
 0x40e   :  { %1475 = vrcp.f32 %v628_v11 }
 0x411   :  { %v631_v12 = vpop.xlane.xlu0 %630  ;;  %v634_v14 = vpop.xlane.xlu1 %633 }
 0x412   :  { %1477 = vrcp.f32 %v631_v12 }
 0x413   :  { %1479 = vrcp.f32 %v634_v14 }
 0x415   :  { %v637_v15 = vpop.xlane.xlu0 %636  ;;  %v1008_v22 = vpop.permute.xlu1 %1007 }
 0x416   :  { %1481 = vrcp.f32 %v637_v15  ;;  %v1013_v28 = vsel %vm675_vm3, %v1008_v22, 0 }
 0x418   :  { %v1476_v26 = vpop.eup %1475 }
 0x419   :  { %v650_v21 = vmul.f32 %v1476_v26, %v1727_v37  ;;  %v960_v27 = vpop.permute.xlu0 %959 }
 0x41a   :  { %v965_v19 = vsel %vm675_vm3, %v960_v27, 0 }
 0x41b   :  { %658 = vst.msk [vmem:[%s1862_s8 + $0x20] sm:$0xff] %vm176_vm2, %v650_v21  ;;  %v666_v16 = vpack.c.bf16 %v650_v21, %v650_v21 }
 0x41c   :  { %v1478_v17 = vpop.eup %1477 }
 0x41d   :  { %v1480_v13 = vpop.eup %1479  ;;  %v651_v18 = vmul.f32 %v1478_v17, %v1729_v33  ;;  %1361 = vmatmul.mubr.msk.bf16.vlgmr.msra.gmra.mrb[24].mxu1 %vm176_vm2, %v666_v16 }
 0x41e   :  { %v652_v20 = vmul.f32 %v1480_v13, %v1733_v48  ;;  %1371 = vmatpush3.bf16.msra.mxu1 %v965_v19  ;;  %1372 = vmatprep.mubr.msk.bf16.mxu1 %vm1512_vm1, %v1511_v8  ;;  %v1092_v19 = vlaneseq }
 0x41f   :  { %659 = vst.msk [vmem:[%s1862_s8 + $0x28] sm:$0xff] %vm176_vm2, %v651_v18  ;;  %v667_v23 = vpack.c.bf16 %v651_v18, %v651_v18  ;;  %1382 = vmatprep.subr.bf16.mxu1 %v1511_v8 }
 0x420   :  { %v1482_v24 = vpop.eup %1481  ;;  %660 = vst.msk [vmem:[%s1862_s8 + $0x30] sm:$0xff] %vm176_vm2, %v652_v20  ;;  %v668_v29 = vpack.c.bf16 %v652_v20, %v652_v20  ;;  %v1093_v20 = vshrl.u32 %v1092_v19, 7 }
 0x421   :  { %v653_v25 = vmul.f32 %v1482_v24, %v1739_v52  ;;  %1367 = vmatmul.mubr.msk.bf16.vlgmr.msra.gmra.mrb[28].mxu0 %vm176_vm2, %v667_v23  ;;  %v34_v23 = vld [vmem:[%s1860_s6] sm:$0x7]  ;;  %s1521_s6 = smov [#allocation2]  }
 0x422   :  { %1377 = vmatpush3.bf16.msra.mxu0 %v1013_v28  ;;  %1378 = vmatprep.mubr.msk.bf16.mxu0 %vm1512_vm1, %v1511_v8  ;;  %v1094_v22 = vsub.s32 0, %v1093_v20  ;;  %s1200_s18 = sshll.u32 %s1521_s6, 4  ;;  %s1201_s18 = int_to_ptr.vmem [resolvable:$true] %s1200_s18 }
 0x423   :  { %661 = vst.msk [vmem:[%s1862_s8 + $0x38] sm:$0xff] %vm176_vm2, %v653_v25  ;;  %v669_v30 = vpack.c.bf16 %v653_v25, %v653_v25  ;;  %s1518_s8 = smov 8   ;;  %s1487_s19 = scalar_lea.vmem %s1201_s18, 256 }
 0x424   :  { %v1095_v24 = vrot.slane %v34_v23, %v1094_v22  ;;  %p1488_p0 = scmp.ne.s32.totalorder %s1201_s18, %s1487_s19  ;;  %p1492_p1 = scmp.lt.s32.totalorder %s1201_s18, %s1201_s18 }
 0x425   :  { %1373 = vmatmul.mubr.msk.bf16.vlgmr.msra.gmra.mrb[28].mxu1 %vm176_vm2, %v668_v29  ;;  %p1493_p2 = scmp.lt.s32.totalorder %s1487_s19, %s1487_s19 }
 0x426   :  { %1386 = vmatprep.mubr.msk.bf16.mxu1 %vm1512_vm1, %v1511_v8  ;;  %1383 = vmatpush3.bf16.msra.mxu1 %v1449_v50 }
 0x427   :  { %1384 = vmatprep.subr.bf16.mxu1 %v1511_v8  ;;  %p1494_p3 = por %p1493_p2, %p1492_p1 }
 0x429   :  { %1379 = vmatmul.mubr.msk.bf16.vlgmr.msra.gmra.mrb[32].mxu0 %vm176_vm2, %v669_v30  ;;  %p1495_p4 = pnand %p1494_p3, %p1488_p0 }
 0x42a   :  { %1385 = vmatpush3.bf16.msra.mxu1 %v1450_v55 }
 0x462   :  { %v761_v31 = vpop.f32.mrb[20].mxu0 }
 0x463   :  { %v1344_v32 = vpop.f32.mrb[21].mxu0 }
 0x464   :  { %v764_v34 = vpop.f32.mrb[22].mxu0 }
 0x465   :  { %v1345_v35 = vpop.f32.mrb[23].mxu0 }
 0x466   :  { %v713_v36 = vpop.f32.mrb[16].mxu1 }
 0x467   :  { %v1338_v38 = vpop.f32.mrb[17].mxu1 }
 0x468   :  { %v716_v39 = vpop.f32.mrb[18].mxu1 }
 0x469   :  { %v1339_v40 = vpop.f32.mrb[19].mxu1 }
 0x4bb   :  { %v809_v43 = vpop.f32.mrb[20].mxu1 }
 0x4bc   :  { %v1350_v44 = vpop.f32.mrb[21].mxu1 }
 0x4bd   :  { %v812_v37 = vpop.f32.mrb[22].mxu1 }
 0x4be   :  { %v1351_v33 = vpop.f32.mrb[23].mxu1 }
 0x4bf   :  { %v857_v47 = vpop.f32.mrb[24].mxu0 }
 0x4c0   :  { %v1432_v46 = vpack.i.bf16 %v857_v47, %v809_v43  ;;  %v1356_v45 = vpop.f32.mrb[25].mxu0 }
 0x4c1   :  { %v860_v48 = vpop.f32.mrb[26].mxu0 }
 0x4c2   :  { %v1357_v49 = vpop.f32.mrb[27].mxu0  ;;  %1433 = vrot.lane.b32.xlu0 %v1432_v46, %s1518_s8 }
 0x4f0   :  { %v905_v51 = vpop.f32.mrb[24].mxu1 }
 0x4f1   :  { %v1362_v52 = vpop.f32.mrb[25].mxu1 }
 0x4f2   :  { %v908_v53 = vpop.f32.mrb[26].mxu1 }
 0x4f3   :  { %v1363_v54 = vpop.f32.mrb[27].mxu1  ;;  %v1183_v53 = vsub.s32 1, %v1093_v20 }
 0x4f4   :  { %v953_v56 = vpop.f32.mrb[28].mxu0  ;;  %v1189_v54 = vsub.s32 2, %v1093_v20 }
 0x4f5   :  { %v1437_v57 = vpack.i.bf16 %v953_v56, %v905_v51  ;;  %v1368_v58 = vpop.f32.mrb[29].mxu0  ;;  %v1184_v55 = vrot.slane %v34_v23, %v1183_v53 }
 0x4f6   :  { %v956_v59 = vpop.f32.mrb[30].mxu0 }
 0x4f7   :  { %v1369_v60 = vpop.f32.mrb[31].mxu0  ;;  %1438 = vrot.lane.b32.xlu1 %v1437_v57, %s1519_s1  ;;  %v1190_v57 = vrot.slane %v34_v23, %v1189_v54 }
 0x4f8   :  { %v1001_v61 = vpop.f32.mrb[28].mxu1 }
 0x4f9   :  { %v1374_v62 = vpop.f32.mrb[29].mxu1 }
 0x4fa   :  { %v1004_v63 = vpop.f32.mrb[30].mxu1 }
 0x4fb   :  { %v1375_v8 = vpop.f32.mrb[31].mxu1 }
 0x4fc   :  { %v1049_v0 = vpop.f32.mrb[32].mxu0 }
 0x4fd   :  { %v1442_v1 = vpack.i.bf16 %v1049_v0, %v1001_v61  ;;  %v1380_v4 = vpop.f32.mrb[33].mxu0 }
 0x4fe   :  { %v1052_v5 = vpop.f32.mrb[34].mxu0 }
 0x4ff   :  { %v1381_v41 = vpop.f32.mrb[35].mxu0  ;;  %1443 = vrot.lane.b32.xlu0 %v1442_v1, %s1520_s5 }
 0x534   :  { %v1434_v6 = vpop.permute.xlu0 %1433 }
 0x535   :  { %v1436_v42 = vunpack.i.h.bf16 %v1434_v6  ;;  %v1435_v9 = vunpack.i.l.bf16 %v1434_v6 }
 0x537   :  { %v1080_v14 = vsel %vm176_vm2, %v761_v31, %v1436_v42  ;;  %v1079_v15 = vsel %vm176_vm2, %v713_v36, %v1435_v9 }
 0x569   :  { %v1439_v7 = vpop.permute.xlu1 %1438 }
 0x56a   :  { %v1441_v10 = vunpack.i.h.bf16 %v1439_v7  ;;  %v1440_v11 = vunpack.i.l.bf16 %v1439_v7 }
 0x56c   :  { %v1083_v27 = vsel %vm1081_vm4, %v1080_v14, %v1441_v10  ;;  %v1082_v16 = vsel %vm1081_vm4, %v1079_v15, %v1440_v11 }
 0x571   :  { %v1444_v12 = vpop.permute.xlu0 %1443 }
 0x572   :  { %v1446_v26 = vunpack.i.h.bf16 %v1444_v12  ;;  %v1445_v21 = vunpack.i.l.bf16 %v1444_v12 }
 0x574   :  { %v1086_v17 = vsel %vm1084_vm5, %v1083_v27, %v1446_v26  ;;  %v1085_v13 = vsel %vm1084_vm5, %v1082_v16, %v1445_v21 }
 0x575   :  { %v1087_v18 = vpack.c.bf16 %v1086_v17, %v1085_v13 }
 0x577   :  { %1387 = vmatmul.mubr.msk.bf16.vlgmr.msra.gmra.mrb[32].mxu1 %vm60_vm0, %v1087_v18 }
 0x64a   :  { %v1145_v25 = vpop.f32.mrb[32].mxu1 }
 0x64b   :  { %v1146_v28 = vadd.f32 %v1145_v25, %v1095_v24  ;;  %v1388_v29 = vpop.f32.mrb[33].mxu1 }
 0x64c   :  { %v1148_v30 = vpop.f32.mrb[34].mxu1 }
 0x64d   :  { %v1149_v31 = vadd.f32 %v1148_v30, %v1095_v24  ;;  %v1389_v32 = vpop.f32.mrb[35].mxu1  ;;  %v1152_v34 = vadd.f32 %v1146_v28, %v1577_v2 }
 0x64f   :  { %v1154_v35 = vsel %vm60_vm0, %v1152_v34, 0.0  ;;  %v1153_v36 = vadd.f32 %v1149_v31, %v1582_v3 }
 0x650   :  { %1155 = vadd.xlane.f32.xlu1 %v1154_v35 }
 0x651   :  { %v1157_v38 = vsel %vm60_vm0, %v1153_v36, 0.0 }
 0x652   :  { %1158 = vadd.xlane.f32.xlu0 %v1157_v38 }
 0x6dd   :  { %v1156_v39 = vpop.xlane.xlu1 %1155 }
 0x6de   :  { %v1161_v40 = vmul.f32 0.03125, %v1156_v39 }
 0x6df   :  { %v1159_v43 = vpop.xlane.xlu0 %1158 }
 0x6e0   :  { %v1163_v44 = vsub.f32 %v1152_v34, %v1161_v40  ;;  %v1162_v37 = vmul.f32 0.03125, %v1159_v43 }
 0x6e2   :  { %v1164_v33 = vsub.f32 %v1153_v36, %v1162_v37  ;;  %v1165_v47 = vmul.f32 %v1163_v44, %v1163_v44 }
 0x6e4   :  { %v1167_v46 = vsel %vm60_vm0, %v1165_v47, 0.0  ;;  %v1166_v45 = vmul.f32 %v1164_v33, %v1164_v33 }
 0x6e5   :  { %1168 = vadd.xlane.f32.xlu0 %v1167_v46 }
 0x6e6   :  { %v1170_v2 = vsel %vm60_vm0, %v1166_v45, 0.0 }
 0x6e7   :  { %1171 = vadd.xlane.f32.xlu1 %v1170_v2 }
 0x772   :  { %v1169_v48 = vpop.xlane.xlu0 %1168 }
 0x773   :  { %v1173_v3 = vmul.f32 0.03125, %v1169_v48 }
 0x774   :  { %v1172_v49 = vpop.xlane.xlu1 %1171 }
 0x775   :  { %v1175_v50 = vadd.f32 1e-05, %v1173_v3  ;;  %v1174_v51 = vmul.f32 0.03125, %v1172_v49 }
 0x777   :  { %1483 = vrsqrt.f32 %v1175_v50  ;;  %v1176_v52 = vadd.f32 1e-05, %v1174_v51 }
 0x779   :  { %1485 = vrsqrt.f32 %v1176_v52 }
 0x781   :  { %v1484_v56 = vpop.eup %1483 }
 0x782   :  { %v1179_v58 = vmul.f32 %v1484_v56, %v1163_v44 }
 0x783   :  { %v1486_v59 = vpop.eup %1485 }
 0x784   :  { %v1180_v60 = vmul.f32 %v1486_v59, %v1164_v33  ;;  %v1185_v61 = vmul.f32 %v1184_v55, %v1179_v58 }
 0x786   :  { %v1186_v62 = vmul.f32 %v1184_v55, %v1180_v60  ;;  %v1191_v63 = vadd.f32 %v1190_v57, %v1185_v61 }
 0x788   :  { %v1192_v8 = vadd.f32 %v1190_v57, %v1186_v62  ;;  %1193 = vst.msk [vmem:[#allocation2] sm:$0xff] %vm60_vm0, %v1191_v63 }
 0x78a   :  { %1194 = vst.msk [vmem:[#allocation2 + $0x8] sm:$0xff] %vm60_vm0, %v1192_v8 }
 0x78b   :  { %1498 = shalt.err (!%p1495_p4)
}
 0x78c   :  { %s1499_s2 = scalar_lea.hbm %s1861_s7, 256 }
 0x78d   :  { %p1500_p5 = scmp.ne.s32.totalorder %s1861_s7, %s1499_s2  ;;  %p1503_p6 = scmp.lt.u32.totalorder %s1499_s2, %s1861_s7 }
 0x78f   :  { %p1505_p7 = pnand %p1503_p6, %p1500_p5 }
 0x791   :  { %1508 = shalt.err (!%p1505_p7)
}
 0x792   :  { %s1522_s26 = smov 128  }
 0x793   :  { %1206 = dma.vmem_to_hbm [thread:$0]  %s1201_s18, 256, %s1861_s7, [#allocation3], %s1522_s26, %s1522_s26, %s1518_s8  }
 0x794   :  { %1509 = dma.done.wait [#allocation3], 256  }
 0x795   :  { %1510 = vsyncadd [#allocation3], 4294967040 }
 0x796   :  { %1214 = vsyncpa [#allocation3], 1 }

</bundles_post_ra>
